<compile_context>
chip_gen: v5e
topology: v5e:2x2
jax: 0.10.0
libtpu: 0.0.40
codegen_flags: <defaults>
</compile_context>

<pallas_src>
import jax
import jax.numpy as jnp
from jax.experimental import pallas as pl
from jax.experimental.pallas import tpu as pltpu


def _round_up(x, m):
    return (x + m - 1) // m * m


def _relation_kernel(a_ref, b_ref, w1a_ref, w1b_ref, b1_ref, w2_ref, b2_ref, o_ref):
    # fc1 on the (implicitly concatenated) input; f32 accumulation on the MXU.
    h = (
        jnp.dot(a_ref[...], w1a_ref[...], preferred_element_type=jnp.float32)
        + jnp.dot(b_ref[...], w1b_ref[...], preferred_element_type=jnp.float32)
        + b1_ref[...]
    )
    h = jnp.maximum(h, 0.0)  # (tile_n, hidden) f32

    # fc2 as VPU multiply + lane reduce; result stored as a lane-dense
    # (1, tile_n) row (full unmasked vst to the (1, N_pad) output slab).
    y = jnp.sum(h * w2_ref[...], axis=-1) + b2_ref[0, 0]  # (tile_n,) f32
    o_ref[...] = y[None, :].astype(o_ref.dtype)


def relation_network_forward(a, b, params, *, tile_n=512):
    """a, b: (B0, B1, F) arrays. Returns (B0*B1, 1) float32."""
    w1, b1, w2, b2 = params["w1"], params["b1"], params["w2"], params["b2"]

    n_examples = a.shape[0] * a.shape[1]
    a_flat = a.reshape(n_examples, -1)
    b_flat = b.reshape(n_examples, -1)
    fa = a_flat.shape[1]
    fb = b_flat.shape[1]
    assert fa + fb == w1.shape[0], "concat feature dim must equal fc1 input_size"
    hidden = w1.shape[1]

    # MXU operand dtype follows the activations (no wrapper re-cast of the big
    # activation arrays).  Weights are tiny + VMEM-resident, so casting them to
    # match is free.
    mat_dtype = jnp.promote_types(a_flat.dtype, b_flat.dtype)
    a_flat = a_flat.astype(mat_dtype)
    b_flat = b_flat.astype(mat_dtype)

    # Row tile: multiple of 128 so the (1, tile_n) output row is lane-dense,
    # clamped so tiny batches don't over-pad.
    tile_n = max(128, min(tile_n, _round_up(n_examples, 128)))
    tile_n = _round_up(tile_n, 128)
    n_pad = _round_up(n_examples, tile_n)
    num_tiles = n_pad // tile_n

    if n_pad != n_examples:  # pad rows only when actually ragged
        pad_rows = n_pad - n_examples
        a_flat = jnp.pad(a_flat, ((0, pad_rows), (0, 0)))
        b_flat = jnp.pad(b_flat, ((0, pad_rows), (0, 0)))

    # Split W1 (input_size, hidden) into the rows consumed by `a` and by `b`.
    w1a = w1[:fa, :].astype(mat_dtype)
    w1b = w1[fa:, :].astype(mat_dtype)
    b1_row = b1.reshape(1, hidden).astype(jnp.float32)
    w2_row = w2.reshape(1, hidden).astype(jnp.float32)  # (hidden, 1) -> row
    b2_scalar = b2.reshape(1, 1).astype(jnp.float32)

    out_row = pl.pallas_call(
        _relation_kernel,
        out_shape=jax.ShapeDtypeStruct((1, n_pad), jnp.float32),
        grid=(num_tiles,),
        in_specs=[
            pl.BlockSpec((tile_n, fa), lambda i: (i, 0)),
            pl.BlockSpec((tile_n, fb), lambda i: (i, 0)),
            pl.BlockSpec((fa, hidden), lambda i: (0, 0)),   # resident weights
            pl.BlockSpec((fb, hidden), lambda i: (0, 0)),
            pl.BlockSpec((1, hidden), lambda i: (0, 0)),    # b1 row
            pl.BlockSpec((1, hidden), lambda i: (0, 0)),    # w2 row
            pl.BlockSpec(memory_space=pltpu.MemorySpace.SMEM),  # b2 scalar
        ],
        out_specs=pl.BlockSpec((1, tile_n), lambda i: (0, i)),
        compiler_params=pltpu.CompilerParams(
            dimension_semantics=("parallel",)),
    )(a_flat, b_flat, w1a, w1b, b1_row, w2_row, b2_scalar)

    # Drop the row padding and restore the (N, 1) PyTorch output layout.
    return out_row.reshape(-1)[:n_examples].reshape(n_examples, 1)


def init_params(key, input_size=32, hidden_size=16):
    """Deterministic synthetic parameters (PyTorch-like uniform fan-in init)."""
    k1, k2, k3, k4 = jax.random.split(key, 4)
    bound1 = 1.0 / jnp.sqrt(input_size)
    bound2 = 1.0 / jnp.sqrt(hidden_size)
    # Stored already-transposed relative to PyTorch (so y = x @ w + b).
    w1 = jax.random.uniform(k1, (input_size, hidden_size), jnp.float32, -bound1, bound1)
    b1 = jax.random.uniform(k2, (hidden_size,), jnp.float32, -bound1, bound1)
    w2 = jax.random.uniform(k3, (hidden_size, 1), jnp.float32, -bound2, bound2)
    b2 = jax.random.uniform(k4, (1,), jnp.float32, -bound2, bound2)
    return {"w1": w1, "b1": b1, "w2": w2, "b2": b2}


def reference_forward(a, b, params):
    """Pure-JAX reference of the PyTorch forward, for correctness checks."""
    n = a.shape[0] * a.shape[1]
    x = jnp.concatenate(
        [a.reshape(n, -1).astype(jnp.float32), b.reshape(n, -1).astype(jnp.float32)],
        axis=1)
    h = jnp.maximum(x @ params["w1"] + params["b1"], 0.0)
    return h @ params["w2"] + params["b2"]


if __name__ == "__main__":
    key = jax.random.PRNGKey(0)
    kp, ka, kb, kc, kd = jax.random.split(key, 5)

    input_size, hidden_size = 32, 16
    params = init_params(kp, input_size=input_size, hidden_size=hidden_size)

    # --- Test 1: f32 path, single tile (a/b each contribute 16 features). ---
    a = jax.random.normal(ka, (2, 4, 16), jnp.float32)
    b = jax.random.normal(kb, (2, 4, 16), jnp.float32)
    ref = reference_forward(a, b, params)
    out = jax.block_until_ready(relation_network_forward(a, b, params))
    assert out.shape == (8, 1)
    assert jnp.allclose(out, ref, atol=1e-5, rtol=1e-5)

    # --- Test 2: bf16 activations (bf16 MXU operands, f32 accumulation). ---
    out_bf16 = jax.block_until_ready(
        relation_network_forward(a.astype(jnp.bfloat16), b.astype(jnp.bfloat16), params))
    assert out_bf16.shape == (8, 1)
    assert jnp.allclose(out_bf16, ref, atol=1e-1, rtol=1e-1)

    # --- Test 3: multi-tile grid + ragged row padding (N=150, tile_n=128). ---
    a2 = jax.random.normal(kc, (3, 50, 16), jnp.float32)
    b2 = jax.random.normal(kd, (3, 50, 16), jnp.float32)
    ref2 = reference_forward(a2, b2, params)
    out2 = jax.block_until_ready(
        relation_network_forward(a2, b2, params, tile_n=128))
    assert out2.shape == (150, 1)
    assert jnp.allclose(out2, ref2, atol=1e-5, rtol=1e-5)

    print("KERNEL_OK")
</pallas_src>

<mosaic_0001>
module attributes {stable_mosaic.version = 11 : i64} {
  func.func @_relation_kernel(%arg0: i32, %arg1: memref<128x16xf32, #tpu.memory_space<vmem>>, %arg2: memref<128x16xf32, #tpu.memory_space<vmem>>, %arg3: memref<16x16xf32, #tpu.memory_space<vmem>>, %arg4: memref<16x16xf32, #tpu.memory_space<vmem>>, %arg5: memref<1x16xf32, #tpu.memory_space<vmem>>, %arg6: memref<1x16xf32, #tpu.memory_space<vmem>>, %arg7: memref<1x1xf32, #tpu.memory_space<smem>>, %arg8: memref<1x128xf32, #tpu.memory_space<vmem>>) attributes {dimension_semantics = [#tpu.dimension_semantics<parallel>], iteration_bounds = array<i64: 1>, scalar_prefetch = 0 : i64, scratch_operands = 0 : i64, tpu.core_type = #tpu.core_type<tc>, window_params = [{transform_indices = @transform_0, window_bounds = array<i64: 128, 16>}, {transform_indices = @transform_1, window_bounds = array<i64: 128, 16>}, {pipeline_mode = #tpu.pipeline_mode<synchronous>, transform_indices = @transform_2, window_bounds = array<i64: 16, 16>}, {pipeline_mode = #tpu.pipeline_mode<synchronous>, transform_indices = @transform_3, window_bounds = array<i64: 16, 16>}, {pipeline_mode = #tpu.pipeline_mode<synchronous>, transform_indices = @transform_4, window_bounds = array<i64: 1, 16>}, {pipeline_mode = #tpu.pipeline_mode<synchronous>, transform_indices = @transform_5, window_bounds = array<i64: 1, 16>}, {transform_indices = @transform_6, window_bounds = array<i64: 1, 1>}, {transform_indices = @transform_7, window_bounds = array<i64: 1, 128>}]} {
    %c0 = arith.constant 0 : index
    %c0_0 = arith.constant 0 : index
    %0 = vector.load %arg1[%c0, %c0_0] : memref<128x16xf32, #tpu.memory_space<vmem>>, vector<128x16xf32>
    %c0_1 = arith.constant 0 : index
    %c0_2 = arith.constant 0 : index
    %1 = vector.load %arg3[%c0_1, %c0_2] : memref<16x16xf32, #tpu.memory_space<vmem>>, vector<16x16xf32>
    %cst = arith.constant dense<0.000000e+00> : vector<128x16xf32>
    %2 = tpu.matmul %0, %1, %cst {dimension_numbers = #tpu.dot_dimension_numbers<[1], [0], [0], [1], [0, 0, 1, 1], [], []>} : vector<128x16xf32>, vector<16x16xf32>, vector<128x16xf32> -> vector<128x16xf32>
    %c0_3 = arith.constant 0 : index
    %c0_4 = arith.constant 0 : index
    %3 = vector.load %arg2[%c0_3, %c0_4] : memref<128x16xf32, #tpu.memory_space<vmem>>, vector<128x16xf32>
    %c0_5 = arith.constant 0 : index
    %c0_6 = arith.constant 0 : index
    %4 = vector.load %arg4[%c0_5, %c0_6] : memref<16x16xf32, #tpu.memory_space<vmem>>, vector<16x16xf32>
    %cst_7 = arith.constant dense<0.000000e+00> : vector<128x16xf32>
    %5 = tpu.matmul %3, %4, %cst_7 {dimension_numbers = #tpu.dot_dimension_numbers<[1], [0], [0], [1], [0, 0, 1, 1], [], []>} : vector<128x16xf32>, vector<16x16xf32>, vector<128x16xf32> -> vector<128x16xf32>
    %6 = arith.addf %2, %5 : vector<128x16xf32>
    %c0_8 = arith.constant 0 : index
    %c0_9 = arith.constant 0 : index
    %7 = vector.load %arg5[%c0_8, %c0_9] : memref<1x16xf32, #tpu.memory_space<vmem>>, vector<1x16xf32>
    %8 = vector.broadcast %7 : vector<1x16xf32> to vector<128x16xf32>
    %9 = arith.addf %6, %8 : vector<128x16xf32>
    %cst_10 = arith.constant 0.000000e+00 : f32
    %10 = vector.broadcast %cst_10 : f32 to vector<128x16xf32>
    %11 = arith.maximumf %9, %10 : vector<128x16xf32>
    %c0_11 = arith.constant 0 : index
    %c0_12 = arith.constant 0 : index
    %12 = vector.load %arg6[%c0_11, %c0_12] : memref<1x16xf32, #tpu.memory_space<vmem>>, vector<1x16xf32>
    %13 = vector.broadcast %12 : vector<1x16xf32> to vector<128x16xf32>
    %14 = arith.mulf %11, %13 : vector<128x16xf32>
    %cst_13 = arith.constant dense<0.000000e+00> : vector<128xf32>
    %15 = vector.multi_reduction <add>, %14, %cst_13 [1] : vector<128x16xf32> to vector<128xf32>
    %c0_14 = arith.constant 0 : index
    %c0_15 = arith.constant 0 : index
    %16 = memref.load %arg7[%c0_14, %c0_15] : memref<1x1xf32, #tpu.memory_space<smem>>
    %17 = vector.broadcast %16 : f32 to vector<128xf32>
    %18 = arith.addf %15, %17 : vector<128xf32>
    %19 = vector.shape_cast %18 : vector<128xf32> to vector<1x128xf32>
    %c0_16 = arith.constant 0 : index
    %c0_17 = arith.constant 0 : index
    %20 = vector.load %arg8[%c0_16, %c0_17] : memref<1x128xf32, #tpu.memory_space<vmem>>, vector<1x128xf32>
    tpu.vector_store %arg8[%c0_16, %c0_17], %19 {strides = array<i32>} : memref<1x128xf32, #tpu.memory_space<vmem>>, vector<1x128xf32>,
    return
  }
  func.func @transform_0(%arg0: i32) -> (i32, i32) {
    %c0_i32 = arith.constant 0 : i32
    %c0_i32_0 = arith.constant 0 : i32
    return %arg0, %c0_i32 : i32, i32
  }
  func.func @transform_1(%arg0: i32) -> (i32, i32) {
    %c0_i32 = arith.constant 0 : i32
    %c0_i32_0 = arith.constant 0 : i32
    return %arg0, %c0_i32 : i32, i32
  }
  func.func @transform_2(%arg0: i32) -> (i32, i32) {
    %c0_i32 = arith.constant 0 : i32
    %c0_i32_0 = arith.constant 0 : i32
    %c0_i32_1 = arith.constant 0 : i32
    return %c0_i32, %c0_i32_0 : i32, i32
  }
  func.func @transform_3(%arg0: i32) -> (i32, i32) {
    %c0_i32 = arith.constant 0 : i32
    %c0_i32_0 = arith.constant 0 : i32
    %c0_i32_1 = arith.constant 0 : i32
    return %c0_i32, %c0_i32_0 : i32, i32
  }
  func.func @transform_4(%arg0: i32) -> (i32, i32) {
    %c0_i32 = arith.constant 0 : i32
    %c0_i32_0 = arith.constant 0 : i32
    %c0_i32_1 = arith.constant 0 : i32
    return %c0_i32, %c0_i32_0 : i32, i32
  }
  func.func @transform_5(%arg0: i32) -> (i32, i32) {
    %c0_i32 = arith.constant 0 : i32
    %c0_i32_0 = arith.constant 0 : i32
    %c0_i32_1 = arith.constant 0 : i32
    return %c0_i32, %c0_i32_0 : i32, i32
  }
  func.func @transform_6(%arg0: i32) -> (i32, i32) {
    %c0_i32 = arith.constant 0 : i32
    %c0_i32_0 = arith.constant 0 : i32
    %c0_i32_1 = arith.constant 0 : i32
    return %c0_i32, %c0_i32_0 : i32, i32
  }
  func.func @transform_7(%arg0: i32) -> (i32, i32) {
    %c0_i32 = arith.constant 0 : i32
    %c0_i32_0 = arith.constant 0 : i32
    return %c0_i32, %arg0 : i32, i32
  }
}

</mosaic_0001>

<bundles_post_ra>
// kernel: tpu_custom_call.1
= control target key start
LH: loop header
LB: loop body
LE: loop exit
PB: predicated region body
PF: predicated region fallthrough
CT: control target
= control target key end

     0   :  { %vm64_vm0 = vcmask 130048   ;;  %s856_s0 = inlined_call_operand.vmem [shape: f32[128,16], index: 0, kind: input, shape index: {}]   ;;  %s857_s1 = inlined_call_operand.vmem [shape: f32[128,16], index: 1, kind: input, shape index: {}]   ;;  %s858_s2 = inlined_call_operand.vmem [shape: f32[16,16], index: 2, kind: input, shape index: {}]   ;;  %s859_s3 = inlined_call_operand.vmem [shape: f32[16,16], index: 3, kind: input, shape index: {}]   ;;  %s860_s4 = inlined_call_operand.vmem [shape: f32[1,16], index: 4, kind: input, shape index: {}]   ;;  %s861_s5 = inlined_call_operand.vmem [shape: f32[1,16], index: 5, kind: input, shape index: {}]   ;;  %s862_s6 = inlined_call_operand.<no memory space> [shape: f32[1,1], index: 6, kind: input, shape index: {}]   ;;  %s863_s7 = inlined_call_operand.hbm [shape: f32[1,128], index: 7, kind: output, shape index: {}]  }
   0x1   :  { %v63_v0 = vld [vmem:[%s859_s3 + $0x8] sm:$0xff]  ;;  %v62_v2 = vld [vmem:[%s859_s3] sm:$0xff] }
   0x2   :  { %v45_v1 = vld [vmem:[%s858_s2 + $0x8] sm:$0xff]  ;;  %127 = vmatpush.msra.mxu0 %v63_v0  ;;  %v44_v3 = vld [vmem:[%s858_s2] sm:$0xff]  ;;  %542 = vmatpush.msra.mxu2 %v63_v0 }
   0x3   :  { %240 = vmatpush.msra.mxu1 %v45_v1  ;;  %v46_v4 = vld [vmem:[%s857_s1] sm:$0xff]  ;;  %544 = vmatpush.msra.mxu3 %v45_v1  ;;  %v47_v8 = vld [vmem:[%s857_s1 + $0x8] sm:$0xff] }
   0x4   :  { %v28_v5 = vld [vmem:[%s856_s0] sm:$0xff]  ;;  %128 = vmatpush.msra.mxu0 %v62_v2  ;;  %543 = vmatpush.msra.mxu2 %v62_v2  ;;  %v29_v9 = vld [vmem:[%s856_s0 + $0x8] sm:$0xff] }
   0x5   :  { %241 = vmatpush.msra.mxu1 %v44_v3  ;;  %v54_v6 = vld [vmem:[%s857_s1 + $0x40] sm:$0xff]  ;;  %510 = vmatmul.msk.f32.vlgmr.msra.gmra.mxu0 %vm64_vm0, %v46_v4 }
   0x6   :  { %v36_v7 = vld [vmem:[%s856_s0 + $0x40] sm:$0xff]  ;;  %526 = vmatmul.msk.f32.vlgmr.msra.gmra.mxu1 %vm64_vm0, %v28_v5  ;;  %545 = vmatpush.msra.mxu3 %v44_v3 }
   0x7   :  { %518 = vmatmul.msk.f32.vlgmr.msra.gmra.mxu2 %vm64_vm0, %v54_v6  ;;  %534 = vmatmul.msk.f32.vlgmr.msra.gmra.mxu3 %vm64_vm0, %v36_v7 }
   0x8   :  { %13 = vsyncpa [#allocation4], 0  ;;  %v55_v10 = vld [vmem:[%s857_s1 + $0x48] sm:$0xff]  ;;  %v48_v12 = vld [vmem:[%s857_s1 + $0x10] sm:$0xff]  ;;  %vm434_vm1 = vcmask 130112   ;;  %vm438_vm2 = vcmask 195712  }
   0x9   :  { %v37_v11 = vld [vmem:[%s856_s0 + $0x48] sm:$0xff]  ;;  %v30_v13 = vld [vmem:[%s856_s0 + $0x10] sm:$0xff]  ;;  %v49_v16 = vld [vmem:[%s857_s1 + $0x18] sm:$0xff]  ;;  %vm442_vm3 = vcmask 261312   ;;  %vm446_vm4 = vcmask 326912   ;;  %vm450_vm5 = vcmask 392512  }
   0xa   :  { %v56_v14 = vld [vmem:[%s857_s1 + $0x50] sm:$0xff]  ;;  %v31_v17 = vld [vmem:[%s856_s0 + $0x18] sm:$0xff]  ;;  %v50_v20 = vld [vmem:[%s857_s1 + $0x20] sm:$0xff]  ;;  %vm454_vm6 = vcmask 458112   ;;  %vm458_vm7 = vcmask 523712   ;;  %vm462_vm8 = vcmask 589312  }
   0xb   :  { %v38_v15 = vld [vmem:[%s856_s0 + $0x50] sm:$0xff]  ;;  %v57_v18 = vld [vmem:[%s857_s1 + $0x58] sm:$0xff]  ;;  %v32_v21 = vld [vmem:[%s856_s0 + $0x20] sm:$0xff]  ;;  %vm466_vm9 = vcmask 654912   ;;  %vm470_vm10 = vcmask 720512   ;;  %vm474_vm11 = vcmask 786112  }
   0xc   :  { %v39_v19 = vld [vmem:[%s856_s0 + $0x58] sm:$0xff]  ;;  %v58_v22 = vld [vmem:[%s857_s1 + $0x60] sm:$0xff]  ;;  %v51_v24 = vld [vmem:[%s857_s1 + $0x28] sm:$0xff]  ;;  %vm478_vm12 = vcmask 851712   ;;  %vm482_vm13 = vcmask 917312   ;;  %vm486_vm14 = vcmask 982912  }
   0xd   :  { %511 = vmatmul.msk.f32.gmra.mxu0 %vm64_vm0, %v47_v8  ;;  %v40_v23 = vld [vmem:[%s856_s0 + $0x60] sm:$0xff]  ;;  %v33_v25 = vld [vmem:[%s856_s0 + $0x28] sm:$0xff]  ;;  %v52_v28 = vld [vmem:[%s857_s1 + $0x30] sm:$0xff]  ;;  %s501_s26 = sshll.u32 %s863_s7, 4  ;;  %vm490_vm15 = vcmask 1048512   ;;  %s502_s26 = int_to_ptr.hbm [resolvable:$true] %s501_s26 }
   0xe   :  { %527 = vmatmul.msk.f32.gmra.mxu1 %vm64_vm0, %v29_v9  ;;  %v59_v26 = vld [vmem:[%s857_s1 + $0x68] sm:$0xff]  ;;  %v34_v29 = vld [vmem:[%s856_s0 + $0x30] sm:$0xff]  ;;  %v53_v32 = vld [vmem:[%s857_s1 + $0x38] sm:$0xff] }
   0xf   :  { %519 = vmatmul.msk.f32.gmra.mxu2 %vm64_vm0, %v55_v10  ;;  %535 = vmatmul.msk.f32.gmra.mxu3 %vm64_vm0, %v37_v11  ;;  %v41_v27 = vld [vmem:[%s856_s0 + $0x68] sm:$0xff]  ;;  %v60_v30 = vld [vmem:[%s857_s1 + $0x70] sm:$0xff]  ;;  %v35_v33 = vld [vmem:[%s856_s0 + $0x38] sm:$0xff] }
  0x10   :  { %v42_v31 = vld [vmem:[%s856_s0 + $0x70] sm:$0xff]  ;;  %v61_v34 = vld [vmem:[%s857_s1 + $0x78] sm:$0xff]  ;;  %v759_v36 = vld [vmem:[%s860_s4] ss:$0 sm:$0xff] }
  0x11   :  { %v43_v35 = vld [vmem:[%s856_s0 + $0x78] sm:$0xff]  ;;  %v765_v41 = vld [vmem:[%s861_s5] ss:$0 sm:$0xff] }
  0x15   :  { %512 = vmatmul.msk.f32.gmra.mxu0 %vm64_vm0, %v48_v12 }
  0x16   :  { %528 = vmatmul.msk.f32.gmra.mxu1 %vm64_vm0, %v30_v13 }
  0x17   :  { %520 = vmatmul.msk.f32.gmra.mxu2 %vm64_vm0, %v56_v14  ;;  %536 = vmatmul.msk.f32.gmra.mxu3 %vm64_vm0, %v38_v15 }
  0x1d   :  { %513 = vmatmul.msk.f32.gmra.mxu0 %vm64_vm0, %v49_v16 }
  0x1e   :  { %529 = vmatmul.msk.f32.gmra.mxu1 %vm64_vm0, %v31_v17 }
  0x1f   :  { %521 = vmatmul.msk.f32.gmra.mxu2 %vm64_vm0, %v57_v18  ;;  %537 = vmatmul.msk.f32.gmra.mxu3 %vm64_vm0, %v39_v19 }
  0x25   :  { %514 = vmatmul.msk.f32.gmra.mxu0 %vm64_vm0, %v50_v20 }
  0x26   :  { %530 = vmatmul.msk.f32.gmra.mxu1 %vm64_vm0, %v32_v21 }
  0x27   :  { %522 = vmatmul.msk.f32.gmra.mxu2 %vm64_vm0, %v58_v22  ;;  %538 = vmatmul.msk.f32.gmra.mxu3 %vm64_vm0, %v40_v23 }
  0x2d   :  { %515 = vmatmul.msk.f32.gmra.mxu0 %vm64_vm0, %v51_v24 }
  0x2e   :  { %531 = vmatmul.msk.f32.gmra.mxu1 %vm64_vm0, %v33_v25 }
  0x2f   :  { %523 = vmatmul.msk.f32.gmra.mxu2 %vm64_vm0, %v59_v26  ;;  %539 = vmatmul.msk.f32.gmra.mxu3 %vm64_vm0, %v41_v27 }
  0x35   :  { %516 = vmatmul.msk.f32.gmra.mxu0 %vm64_vm0, %v52_v28 }
  0x36   :  { %532 = vmatmul.msk.f32.gmra.mxu1 %vm64_vm0, %v34_v29 }
  0x37   :  { %524 = vmatmul.msk.f32.gmra.mxu2 %vm64_vm0, %v60_v30  ;;  %540 = vmatmul.msk.f32.gmra.mxu3 %vm64_vm0, %v42_v31 }
  0x3d   :  { %517 = vmatmul.msk.f32.gmra.mxu0 %vm64_vm0, %v53_v32 }
  0x3e   :  { %533 = vmatmul.msk.f32.gmra.mxu1 %vm64_vm0, %v35_v33 }
  0x3f   :  { %525 = vmatmul.msk.f32.gmra.mxu2 %vm64_vm0, %v61_v34  ;;  %541 = vmatmul.msk.f32.gmra.mxu3 %vm64_vm0, %v43_v35 }
  0x82   :  { %v130_v37 = vpop.f32.mrf.mxu0 }
  0x83   :  { %v243_v38 = vpop.f32.mrf.mxu1 }
  0x84   :  { %v244_v39 = vadd.f32 %v243_v38, %v130_v37 }
  0x86   :  { %v295_v40 = vadd.f32 %v759_v36, %v244_v39 }
  0x88   :  { %v311_v42 = vmax.f32 %v295_v40, 0.0 }
  0x8a   :  { %v331_v43 = vmul.f32 %v765_v41, %v311_v42  ;;  %v133_v44 = vpop.f32.mrf.mxu0  ;;  %v154_v45 = vpop.f32.mrf.mxu2 }
  0x8b   :  { %v246_v46 = vpop.f32.mrf.mxu1  ;;  %v267_v47 = vpop.f32.mrf.mxu3 }
  0x8c   :  { %v347_v48 = vsel %vm64_vm0, %v331_v43, 0.0  ;;  %v247_v49 = vadd.f32 %v246_v46, %v133_v44  ;;  %v268_v50 = vadd.f32 %v267_v47, %v154_v45 }
  0x8d   :  { %348 = vadd.xlane.f32.xlu0 %v347_v48 }
  0x8e   :  { %v296_v51 = vadd.f32 %v759_v36, %v247_v49  ;;  %v303_v52 = vadd.f32 %v759_v36, %v268_v50 }
  0x90   :  { %v312_v53 = vmax.f32 %v296_v51, 0.0  ;;  %v319_v54 = vmax.f32 %v303_v52, 0.0 }
  0x92   :  { %v136_v55 = vpop.f32.mrf.mxu0  ;;  %v157_v56 = vpop.f32.mrf.mxu2  ;;  %v332_v57 = vmul.f32 %v765_v41, %v312_v53  ;;  %v339_v58 = vmul.f32 %v765_v41, %v319_v54 }
  0x93   :  { %v249_v59 = vpop.f32.mrf.mxu1  ;;  %v270_v60 = vpop.f32.mrf.mxu3 }
  0x94   :  { %v250_v61 = vadd.f32 %v249_v59, %v136_v55  ;;  %v271_v62 = vadd.f32 %v270_v60, %v157_v56  ;;  %v350_v63 = vsel %vm64_vm0, %v332_v57, 0.0  ;;  %v371_v0 = vsel %vm64_vm0, %v339_v58, 0.0 }
  0x95   :  { %351 = vadd.xlane.f32.xlu0 %v350_v63  ;;  %372 = vadd.xlane.f32.xlu2 %v371_v0 }
  0x96   :  { %v297_v1 = vadd.f32 %v759_v36, %v250_v61  ;;  %v304_v2 = vadd.f32 %v759_v36, %v271_v62 }
  0x98   :  { %v313_v3 = vmax.f32 %v297_v1, 0.0  ;;  %v320_v4 = vmax.f32 %v304_v2, 0.0 }
  0x9a   :  { %v139_v5 = vpop.f32.mrf.mxu0  ;;  %v160_v6 = vpop.f32.mrf.mxu2  ;;  %v333_v7 = vmul.f32 %v765_v41, %v313_v3  ;;  %v340_v8 = vmul.f32 %v765_v41, %v320_v4 }
  0x9b   :  { %v252_v9 = vpop.f32.mrf.mxu1  ;;  %v273_v10 = vpop.f32.mrf.mxu3 }
  0x9c   :  { %v253_v11 = vadd.f32 %v252_v9, %v139_v5  ;;  %v274_v12 = vadd.f32 %v273_v10, %v160_v6  ;;  %v353_v13 = vsel %vm64_vm0, %v333_v7, 0.0  ;;  %v374_v14 = vsel %vm64_vm0, %v340_v8, 0.0 }
  0x9d   :  { %354 = vadd.xlane.f32.xlu1 %v353_v13  ;;  %375 = vadd.xlane.f32.xlu0 %v374_v14 }
  0x9e   :  { %v305_v15 = vadd.f32 %v759_v36, %v274_v12  ;;  %v298_v16 = vadd.f32 %v759_v36, %v253_v11 }
  0xa0   :  { %v321_v17 = vmax.f32 %v305_v15, 0.0  ;;  %v314_v23 = vmax.f32 %v298_v16, 0.0 }
  0xa2   :  { %v142_v18 = vpop.f32.mrf.mxu0  ;;  %v163_v19 = vpop.f32.mrf.mxu2  ;;  %v341_v20 = vmul.f32 %v765_v41, %v321_v17  ;;  %v334_v28 = vmul.f32 %v765_v41, %v314_v23 }
  0xa3   :  { %v255_v21 = vpop.f32.mrf.mxu1  ;;  %v276_v22 = vpop.f32.mrf.mxu3 }
  0xa4   :  { %v256_v24 = vadd.f32 %v255_v21, %v142_v18  ;;  %v377_v25 = vsel %vm64_vm0, %v341_v20, 0.0  ;;  %v277_v32 = vadd.f32 %v276_v22, %v163_v19  ;;  %v356_v38 = vsel %vm64_vm0, %v334_v28, 0.0 }
  0xa5   :  { %378 = vadd.xlane.f32.xlu1 %v377_v25 }
  0xa6   :  { %v299_v26 = vadd.f32 %v759_v36, %v256_v24  ;;  %v306_v40 = vadd.f32 %v759_v36, %v277_v32 }
  0xa8   :  { %v315_v27 = vmax.f32 %v299_v26, 0.0  ;;  %v322_v46 = vmax.f32 %v306_v40, 0.0 }
  0xaa   :  { %v145_v29 = vpop.f32.mrf.mxu0  ;;  %v166_v30 = vpop.f32.mrf.mxu2  ;;  %v335_v31 = vmul.f32 %v765_v41, %v315_v27  ;;  %v342_v54 = vmul.f32 %v765_v41, %v322_v46 }
  0xab   :  { %v258_v33 = vpop.f32.mrf.mxu1  ;;  %v279_v34 = vpop.f32.mrf.mxu3 }
  0xac   :  { %v259_v35 = vadd.f32 %v258_v33, %v145_v29  ;;  %v359_v37 = vsel %vm64_vm0, %v335_v31, 0.0  ;;  %v280_v47 = vadd.f32 %v279_v34, %v166_v30  ;;  %v380_v62 = vsel %vm64_vm0, %v342_v54, 0.0 }
  0xad   :  { %360 = vadd.xlane.f32.xlu2 %v359_v37  ;;  %357 = vadd.xlane.f32.xlu1 %v356_v38  ;;  %v429_v30 = vlaneseq }
  0xae   :  { %v300_v39 = vadd.f32 %v759_v36, %v259_v35  ;;  %v307_v53 = vadd.f32 %v759_v36, %v280_v47 }
  0xaf   :  { %v814_v31 = vand.u32 127, %v429_v30 }
  0xb0   :  { %v316_v42 = vmax.f32 %v300_v39, 0.0  ;;  %v323_v59 = vmax.f32 %v307_v53, 0.0 }
  0xb1   :  { %v432_v34 = vadd.s32 4294967288, %v814_v31  ;;  %v436_v37 = vadd.s32 4294967280, %v814_v31  ;;  %v440_v40 = vadd.s32 4294967272, %v814_v31  ;;  %v444_v46 = vadd.s32 4294967264, %v814_v31 }
  0xb2   :  { %v148_v43 = vpop.f32.mrf.mxu0  ;;  %v169_v44 = vpop.f32.mrf.mxu2  ;;  %v336_v45 = vmul.f32 %v765_v41, %v316_v42  ;;  %v343_v5 = vmul.f32 %v765_v41, %v323_v59 }
  0xb3   :  { %v261_v48 = vpop.f32.mrf.mxu1  ;;  %v282_v49 = vpop.f32.mrf.mxu3 }
  0xb4   :  { %v262_v50 = vadd.f32 %v261_v48, %v148_v43  ;;  %v362_v51 = vsel %vm64_vm0, %v336_v45, 0.0  ;;  %v283_v63 = vadd.f32 %v282_v49, %v169_v44  ;;  %v383_v13 = vsel %vm64_vm0, %v343_v5, 0.0 }
  0xb5   :  { %363 = vadd.xlane.f32.xlu2 %v362_v51 }
  0xb6   :  { %v301_v52 = vadd.f32 %v759_v36, %v262_v50  ;;  %v308_v6 = vadd.f32 %v759_v36, %v283_v63  ;;  %v448_v50 = vadd.s32 4294967256, %v814_v31  ;;  %v464_v63 = vadd.s32 4294967224, %v814_v31 }
  0xb8   :  { %v317_v55 = vmax.f32 %v301_v52, 0.0  ;;  %v324_v14 = vmax.f32 %v308_v6, 0.0  ;;  %v452_v52 = vadd.s32 4294967248, %v814_v31 }
  0xba   :  { %v151_v56 = vpop.f32.mrf.mxu0  ;;  %v172_v57 = vpop.f32.mrf.mxu2  ;;  %v337_v58 = vmul.f32 %v765_v41, %v317_v55  ;;  %v344_v20 = vmul.f32 %v765_v41, %v324_v14 }
  0xbb   :  { %v264_v60 = vpop.f32.mrf.mxu1  ;;  %v285_v61 = vpop.f32.mrf.mxu3 }
  0xbc   :  { %v265_v0 = vadd.f32 %v264_v60, %v151_v56  ;;  %v286_v1 = vadd.f32 %v285_v61, %v172_v57  ;;  %v365_v2 = vsel %vm64_vm0, %v337_v58, 0.0  ;;  %v386_v22 = vsel %vm64_vm0, %v344_v20, 0.0 }
  0xbd   :  { %381 = vadd.xlane.f32.xlu2 %v380_v62  ;;  %366 = vadd.xlane.f32.xlu0 %v365_v2  ;;  %v460_v56 = vadd.s32 4294967232, %v814_v31  ;;  %v456_v61 = vadd.s32 4294967240, %v814_v31 }
  0xbe   :  { %v302_v3 = vadd.f32 %v759_v36, %v265_v0  ;;  %v309_v4 = vadd.f32 %v759_v36, %v286_v1 }
  0xc0   :  { %v318_v7 = vmax.f32 %v302_v3, 0.0  ;;  %v325_v8 = vmax.f32 %v309_v4, 0.0  ;;  %v468_v4 = vadd.s32 4294967216, %v814_v31 }
  0xc2   :  { %v175_v9 = vpop.f32.mrf.mxu2  ;;  %v338_v10 = vmul.f32 %v765_v41, %v318_v7  ;;  %v345_v11 = vmul.f32 %v765_v41, %v325_v8  ;;  %v472_v8 = vadd.s32 4294967208, %v814_v31 }
  0xc3   :  { %v288_v12 = vpop.f32.mrf.mxu3 }
  0xc4   :  { %v289_v15 = vadd.f32 %v288_v12, %v175_v9  ;;  %v368_v16 = vsel %vm64_vm0, %v338_v10, 0.0  ;;  %v389_v17 = vsel %vm64_vm0, %v345_v11, 0.0 }
  0xc5   :  { %369 = vadd.xlane.f32.xlu1 %v368_v16  ;;  %384 = vadd.xlane.f32.xlu0 %v383_v13  ;;  %v476_v16 = vadd.s32 4294967200, %v814_v31 }
  0xc6   :  { %v310_v18 = vadd.f32 %v759_v36, %v289_v15  ;;  %390 = vadd.xlane.f32.xlu2 %v389_v17 }
  0xc8   :  { %v326_v19 = vmax.f32 %v310_v18, 0.0 }
  0xca   :  { %v346_v21 = vmul.f32 %v765_v41, %v326_v19  ;;  %v819_v41 = vstv %s862_s6  ;;  %s575_s6 = smov [#allocation3]  }
  0xcb   :  { %s499_s23 = sshll.u32 %s575_s6, 4  ;;  %s500_s23 = int_to_ptr.vmem [resolvable:$true] %s499_s23 }
  0xcc   :  { %v392_v23 = vsel %vm64_vm0, %v346_v21, 0.0 }
  0xcd   :  { %387 = vadd.xlane.f32.xlu1 %v386_v22  ;;  %393 = vadd.xlane.f32.xlu0 %v392_v23  ;;  %v480_v23 = vadd.s32 4294967192, %v814_v31 }
 0x100   :  { %v349_v24 = vpop.xlane.xlu0 %348 }
 0x101   :  { %v397_v39 = vadd.f32 %v819_v41, %v349_v24  ;;  %v488_v24 = vadd.s32 4294967176, %v814_v31 }
 0x103   :  { %v431_v48 = vperm.slane %v397_v39, %v814_v31 }
 0x108   :  { %v373_v26 = vpop.xlane.xlu2 %372  ;;  %v352_v27 = vpop.xlane.xlu0 %351 }
 0x109   :  { %v398_v35 = vadd.f32 %v819_v41, %v352_v27  ;;  %v405_v62 = vadd.f32 %v819_v41, %v373_v26  ;;  %v484_v26 = vadd.s32 4294967184, %v814_v31 }
 0x10b   :  { %v433_v44 = vperm.slane %v398_v35, %v432_v34  ;;  %v461_v12 = vperm.slane %v405_v62, %v460_v56 }
 0x10d   :  { %v435_v54 = vsel %vm434_vm1, %v433_v44, %v431_v48 }
 0x110   :  { %v355_v25 = vpop.xlane.xlu1 %354  ;;  %v376_v36 = vpop.xlane.xlu0 %375 }
 0x111   :  { %v399_v38 = vadd.f32 %v819_v41, %v355_v25  ;;  %v406_v3 = vadd.f32 %v819_v41, %v376_v36 }
 0x113   :  { %v437_v45 = vperm.slane %v399_v38, %v436_v37  ;;  %v465_v14 = vperm.slane %v406_v3, %v464_v63 }
 0x115   :  { %v439_v57 = vsel %vm438_vm2, %v437_v45, %v435_v54 }
 0x118   :  { %v379_v29 = vpop.xlane.xlu1 %378 }
 0x119   :  { %v407_v6 = vadd.f32 %v819_v41, %v379_v29 }
 0x11b   :  { %v469_v18 = vperm.slane %v407_v6, %v468_v4 }
 0x120   :  { %v361_v28 = vpop.xlane.xlu2 %360  ;;  %v358_v33 = vpop.xlane.xlu1 %357 }
 0x121   :  { %v400_v42 = vadd.f32 %v819_v41, %v358_v33  ;;  %v401_v47 = vadd.f32 %v819_v41, %v361_v28 }
 0x123   :  { %v441_v49 = vperm.slane %v400_v42, %v440_v40  ;;  %v445_v58 = vperm.slane %v401_v47, %v444_v46 }
 0x125   :  { %v443_v59 = vsel %vm442_vm3, %v441_v49, %v439_v57 }
 0x126   :  { %v447_v7 = vsel %vm446_vm4, %v445_v58, %v443_v59 }
 0x128   :  { %v364_v32 = vpop.xlane.xlu2 %363 }
 0x129   :  { %v402_v51 = vadd.f32 %v819_v41, %v364_v32 }
 0x12b   :  { %v449_v60 = vperm.slane %v402_v51, %v448_v50 }
 0x12d   :  { %v451_v9 = vsel %vm450_vm5, %v449_v60, %v447_v7 }
 0x130   :  { %v367_v43 = vpop.xlane.xlu0 %366  ;;  %v382_v55 = vpop.xlane.xlu2 %381 }
 0x131   :  { %v403_v53 = vadd.f32 %v819_v41, %v367_v43  ;;  %v408_v10 = vadd.f32 %v819_v41, %v382_v55 }
 0x133   :  { %v453_v0 = vperm.slane %v403_v53, %v452_v52  ;;  %v473_v21 = vperm.slane %v408_v10, %v472_v8 }
 0x135   :  { %v455_v13 = vsel %vm454_vm6, %v453_v0, %v451_v9 }
 0x138   :  { %v370_v1 = vpop.xlane.xlu1 %369  ;;  %v385_v2 = vpop.xlane.xlu0 %384 }
 0x139   :  { %v404_v5 = vadd.f32 %v819_v41, %v370_v1  ;;  %v391_v17 = vpop.xlane.xlu2 %390  ;;  %v409_v20 = vadd.f32 %v819_v41, %v385_v2 }
 0x13a   :  { %v411_v27 = vadd.f32 %v819_v41, %v391_v17 }
 0x13b   :  { %v457_v11 = vperm.slane %v404_v5, %v456_v61  ;;  %v477_v33 = vperm.slane %v409_v20, %v476_v16 }
 0x13c   :  { %v485_v37 = vperm.slane %v411_v27, %v484_v26 }
 0x13d   :  { %v459_v15 = vsel %vm458_vm7, %v457_v11, %v455_v13 }
 0x13e   :  { %v463_v19 = vsel %vm462_vm8, %v461_v12, %v459_v15 }
 0x13f   :  { %v467_v22 = vsel %vm466_vm9, %v465_v14, %v463_v19 }
 0x140   :  { %v471_v25 = vsel %vm470_vm10, %v469_v18, %v467_v22  ;;  %v388_v28 = vpop.xlane.xlu1 %387  ;;  %v394_v29 = vpop.xlane.xlu0 %393 }
 0x141   :  { %v475_v30 = vsel %vm474_vm11, %v473_v21, %v471_v25  ;;  %v410_v36 = vadd.f32 %v819_v41, %v388_v28  ;;  %v412_v32 = vadd.f32 %v819_v41, %v394_v29 }
 0x142   :  { %v479_v31 = vsel %vm478_vm12, %v477_v33, %v475_v30 }
 0x143   :  { %v481_v34 = vperm.slane %v410_v36, %v480_v23  ;;  %v489_v35 = vperm.slane %v412_v32, %v488_v24 }
 0x145   :  { %v483_v38 = vsel %vm482_vm13, %v481_v34, %v479_v31 }
 0x146   :  { %v487_v39 = vsel %vm486_vm14, %v485_v37, %v483_v38 }
 0x147   :  { %v491_v40 = vsel %vm490_vm15, %v489_v35, %v487_v39 }
 0x148   :  { %493 = vst [vmem:[#allocation3] sm:$0x1] %v491_v40 }
 0x149   :  { %504 = dma.vmem_to_hbm [thread:$0]  %s500_s23, 16, %s502_s26, [#allocation4]  }
 0x14a   :  { %573 = dma.done.wait [#allocation4], 16  }
 0x14b   :  { %574 = vsyncadd [#allocation4], 4294967280 }
 0x14c   :  { %509 = vsyncpa [#allocation4], 1 }

</bundles_post_ra>
